<compile_context>
chip_gen: v6e
topology: v6e:2x2x1
jax: 0.10.0
libtpu: 0.0.40
codegen_flags: <defaults>
</compile_context>

<pallas_src>
import jax
import jax.numpy as jnp
from jax import lax
from jax.experimental import pallas as pl
from jax.experimental.pallas import tpu as pltpu

_LANE = 128

# ---------------------------------------------------------------------------
# One-off probe: confirm pltpu.roll direction (jnp.roll semantics: y[p] = x[p - shift]).
# The Sobel boundary masks depend on the direction; the probe removes all doubt at the
# cost of one trivial (8, 128) kernel, run once and cached.
_ROLL_MATCHES_JNP = None


def _roll_matches_jnp():
    global _ROLL_MATCHES_JNP
    if _ROLL_MATCHES_JNP is None:
        def probe_kernel(x_ref, o_ref):
            o_ref[...] = pltpu.roll(x_ref[...], 1, axis=1)

        x = jnp.broadcast_to(jnp.arange(_LANE, dtype=jnp.float32), (8, _LANE))
        r = pl.pallas_call(
            probe_kernel,
            out_shape=jax.ShapeDtypeStruct((8, _LANE), jnp.float32),
        )(x)
        # jnp.roll semantics -> r[0, 1] == x[0, 0] == 0; flipped -> r[0, 1] == 2.
        _ROLL_MATCHES_JNP = bool(r[0, 1] == 0.0)
    return _ROLL_MATCHES_JNP


# ---------------------------------------------------------------------------
def _make_kernel(N, H, W, b_tile, roll_like_jnp):
    HW = H * W
    inv_n = 1.0 / HW
    half_inv_n2 = 0.5 / (HW * HW)
    ragged = (pl.cdiv(N, b_tile) * b_tile) != N

    def shift(x, offset):
        # y[..., p] = x[..., (p - offset) mod HW] (circular; caller masks the wrap).
        s = offset % HW if roll_like_jnp else (-offset) % HW
        return pltpu.roll(x, s, axis=1)

    def kernel(o_ref, t_ref, partial_ref):
        # Upcast AFTER the load so bf16 inputs only cost bf16 HBM traffic.
        o = o_ref[...].astype(jnp.float32)
        t = t_ref[...].astype(jnp.float32)
        # PyTorch: x[x <= 0] = 1e-5.  Values in (0, 1e-5) are left untouched, so this must
        # stay a where(), not a maximum().
        o = jnp.where(o <= 0.0, jnp.float32(1e-5), o)
        t = jnp.where(t <= 0.0, jnp.float32(1e-5), t)
        # Two EUP logs + one VALU subtract: lowest-VALU formulation of d, exact vs reference.
        d = jnp.log(o) - jnp.log(t)

        # Boundary masks: built once per grid step from one (1, HW) iota, reused by all
        # eight masked rolls (sublane broadcast of a 1-row mask is cheap).
        flat = lax.broadcasted_iota(jnp.int32, (1, HW), 1)
        row = flat // W
        col = flat - row * W
        left = col == 0
        right = col == (W - 1)
        top = row == 0
        bottom = row == (H - 1)

        def nbr(x, offset, edge):
            # neighbour value with zero padding outside the image
            return jnp.where(edge, 0.0, shift(x, offset))

        # Separable Sobel cross-correlation (== F.conv2d(..., padding=1)):
        #   conv_x[i,j] = t_v[i,j-1] - t_v[i,j+1],  t_v = [1,2,1] vertical smooth of d
        #   conv_y[i,j] = t_h[i-1,j] - t_h[i+1,j],  t_h = [1,2,1] horizontal smooth of d
        # Row/column neighbours are lane rolls by +-W / +-1 on the flattened image row.
        d2 = d + d
        t_v = nbr(d, W, top) + d2 + nbr(d, -W, bottom)
        conv_x = nbr(t_v, 1, left) - nbr(t_v, -1, right)
        quad = conv_x * conv_x                       # accumulate before t_h/conv_y exist
        t_h = nbr(d, 1, left) + d2 + nbr(d, -1, right)
        conv_y = nbr(t_h, W, top) - nbr(t_h, -W, bottom)
        quad = quad + conv_y * conv_y + d * d

        # Fused per-image reductions (grad_loss + term_1 share the 1/n scale) + sum(d).
        s_quad = jnp.sum(quad, axis=1, keepdims=True)   # (b_tile, 1)
        s_d = jnp.sum(d, axis=1, keepdims=True)         # (b_tile, 1)
        p = s_quad * inv_n - (s_d * s_d) * half_inv_n2

        if ragged:
            # Grid does not divide N: the tail block's trailing rows hold unspecified data;
            # each row is computed independently, so just zero their contributions.
            img = (pl.program_id(0) * b_tile
                   + lax.broadcasted_iota(jnp.int32, (b_tile, 1), 0))
            p = jnp.where(img < N, p, 0.0)

        partial_ref[...] = p.reshape(1, b_tile, 1)

    return kernel


def depth_loss(outputs, targets, *, vmem_budget_bytes=36 << 20):
    """outputs, targets: (N, 1, H, W), float32 or bfloat16 (NCHW, as in the PyTorch module)."""
    N, C, H, W = outputs.shape
    assert C == 1, "DepthLoss conv kernels require a single channel"
    assert targets.shape == outputs.shape
    if not jnp.issubdtype(outputs.dtype, jnp.floating):
        outputs = outputs.astype(jnp.float32)
    if not jnp.issubdtype(targets.dtype, jnp.floating):
        targets = targets.astype(jnp.float32)
    HW = H * W

    # Lane-dense view: one flattened image per sublane row.  Reshape of contiguous NCHW is
    # free; no dtype conversion pass (bf16 stays bf16 until inside the kernel).
    o2 = outputs.reshape(N, HW)
    t2 = targets.reshape(N, HW)

    # ---- b_tile from on-chip (lane-padded) sizes, not logical sizes ---------------------
    lanes = pl.cdiv(HW, _LANE) * _LANE
    in_itemsize = max(o2.dtype.itemsize, t2.dtype.itemsize)
    # 2 inputs x 2 pipeline buffers at input width + ~6 live f32 block-sized temporaries.
    per_row_bytes = 4 * lanes * in_itemsize + 6 * lanes * 4
    cap_rows = max(1, int(vmem_budget_bytes) // per_row_bytes)
    sub_align = 8 if in_itemsize >= 4 else 16           # f32 (8,128) vs bf16 (16,128) tiles
    if N <= cap_rows:
        b_tile = N                                      # single block: block dims == array dims
    else:
        b_tile = max(sub_align, (cap_rows // sub_align) * sub_align)
    num_blocks = pl.cdiv(N, b_tile)
    # NOTE: no wrapper-side jnp.pad — a ragged tail block is masked in-kernel instead of
    # copying both inputs through HBM.  Images so large that even one image per block blows
    # the budget would need intra-image tiling with Sobel halos (not implemented here).

    kernel = _make_kernel(N, H, W, b_tile, _roll_matches_jnp())

    partials = pl.pallas_call(
        kernel,
        out_shape=jax.ShapeDtypeStruct((num_blocks, b_tile, 1), jnp.float32),
        grid_spec=pltpu.PrefetchScalarGridSpec(
            num_scalar_prefetch=0,
            grid=(num_blocks,),
            in_specs=[
                pl.BlockSpec((b_tile, HW), lambda b: (b, 0)),
                pl.BlockSpec((b_tile, HW), lambda b: (b, 0)),
            ],
            out_specs=pl.BlockSpec((1, b_tile, 1), lambda b: (b, 0, 0)),
        ),
        compiler_params=pltpu.CompilerParams(
            # Independent per-image partial outputs -> batch axis can shard across cores.
            # On v7x, pltpu.CORE_PARALLEL / pl.core_map may be needed to truly split the
            # grid across both TensorCores; PARALLEL is safe on all generations.
            dimension_semantics=(pltpu.PARALLEL,),
            # 48 MiB: above v5e/v6e scoped defaults (16/32 MiB), below v7x's 64 MiB physical
            # VMEM, and ~12 MiB headroom over the 36 MiB live-data budget used above.
            vmem_limit_bytes=48 << 20,
        ),
    )(o2, t2)
    # Tiny cross-image reduction in plain JAX (masked tail rows contribute exactly 0).
    return jnp.sum(partials)


def depth_loss_ref(outputs, targets):
    """Pure-JAX reference mirroring the PyTorch forward."""
    N, C, H, W = outputs.shape
    n_pixels = H * W
    o = jnp.where(outputs <= 0.0, 1e-05, outputs).astype(jnp.float32)
    t = jnp.where(targets <= 0.0, 1e-05, targets).astype(jnp.float32)
    d = jnp.log(o) - jnp.log(t)
    ka = jnp.array([[1., 0., -1.], [2., 0., -2.], [1., 0., -1.]],
                   jnp.float32).reshape(1, 1, 3, 3)
    kb = jnp.array([[1., 2., 1.], [0., 0., 0.], [-1., -2., -1.]],
                   jnp.float32).reshape(1, 1, 3, 3)
    dn = ("NCHW", "OIHW", "NCHW")
    cx = lax.conv_general_dilated(d, ka, (1, 1), [(1, 1), (1, 1)],
                                  dimension_numbers=dn)
    cy = lax.conv_general_dilated(d, kb, (1, 1), [(1, 1), (1, 1)],
                                  dimension_numbers=dn)
    conv_sum = cx ** 2 + cy ** 2
    grad_loss = conv_sum.reshape(-1, n_pixels).mean(axis=1).sum()
    term_1 = (d.reshape(-1, n_pixels) ** 2).mean(axis=1).sum()
    term_2 = ((d.reshape(-1, n_pixels).sum(axis=1)) ** 2 /
              (2.0 * n_pixels ** 2)).sum()
    return term_1 - term_2 + grad_loss


if __name__ == "__main__":
    key = jax.random.PRNGKey(0)
    k1, k2 = jax.random.split(key)
    N, C, H, W = 2, 1, 16, 16
    # normal draws -> some values <= 0, exercising the clamp path
    outputs = jax.random.normal(k1, (N, C, H, W), jnp.float32) + 1.0
    targets = jax.random.normal(k2, (N, C, H, W), jnp.float32) + 1.0

    loss = jax.block_until_ready(depth_loss(outputs, targets))
    ref = jax.block_until_ready(depth_loss_ref(outputs, targets))

    assert jnp.isfinite(loss), "kernel produced non-finite loss"
    assert jnp.allclose(loss, ref, rtol=1e-4, atol=1e-4), (loss, ref)
    print("KERNEL_OK")
</pallas_src>

<mosaic_0001>
module attributes {stable_mosaic.version = 11 : i64} {
  func.func @probe_kernel(%arg0: memref<8x128xf32, #tpu.memory_space<vmem>>, %arg1: memref<8x128xf32, #tpu.memory_space<vmem>>) attributes {dimension_semantics = [], scalar_prefetch = 0 : i64, scratch_operands = 0 : i64, tpu.core_type = #tpu.core_type<tc>} {
    %c0 = arith.constant 0 : index
    %c0_0 = arith.constant 0 : index
    %0 = vector.load %arg0[%c0, %c0_0] : memref<8x128xf32, #tpu.memory_space<vmem>>, vector<8x128xf32>
    %c1_i32 = arith.constant 1 : i32
    %1 = tpu.dynamic_rotate %0 by %c1_i32 dim 1 : vector<8x128xf32>, i32 -> vector<8x128xf32>
    %c0_1 = arith.constant 0 : index
    %c0_2 = arith.constant 0 : index
    %2 = vector.load %arg1[%c0_1, %c0_2] : memref<8x128xf32, #tpu.memory_space<vmem>>, vector<8x128xf32>
    tpu.vector_store %arg1[%c0_1, %c0_2], %1 {strides = array<i32>} : memref<8x128xf32, #tpu.memory_space<vmem>>, vector<8x128xf32>,
    return
  }
}

</mosaic_0001>

<bundles_post_ra>
// kernel: tpu_custom_call.1
= control target key start
LH: loop header
LB: loop body
LE: loop exit
PB: predicated region body
PF: predicated region fallthrough
CT: control target
= control target key end

     0   :  { %6 = vsyncpa [#allocation3], 0  ;;  %s106_s0 = inlined_call_operand.hbm [shape: f32[8,128], index: 0, kind: input, shape index: {}]   ;;  %s107_s1 = inlined_call_operand.hbm [shape: f32[8,128], index: 1, kind: output, shape index: {}]  }
   0x1   :  { %7 = vsyncpa [#allocation4], 0  ;;  %s87_s6 = smov [#allocation2]  }
   0x2   :  { %s14_s7 = sshll.u32 %s87_s6, 4  ;;  %s15_s7 = int_to_ptr.vmem [resolvable:$true] %s14_s7 }
   0x3   :  { %s51_s8 = scalar_lea.vmem %s15_s7, 128  ;;  %p56_p1 = scmp.lt.s32.totalorder %s15_s7, %s15_s7 }
   0x4   :  { %p52_p0 = scmp.ne.s32.totalorder %s15_s7, %s51_s8  ;;  %p57_p2 = scmp.lt.s32.totalorder %s51_s8, %s51_s8 }
   0x6   :  { %p58_p3 = por %p57_p2, %p56_p1 }
   0x8   :  { %p59_p4 = pnand %p58_p3, %p52_p0 }
   0xa   :  { %62 = shalt.err (!%p59_p4)
}
   0xb   :  { %17 = dma.hbm_to_vmem [thread:$0]  %s106_s0, 128, %s15_s7, [#allocation3]  }
   0xc   :  { %83 = dma.done.wait [#allocation3], 128  }
   0xd   :  { %84 = vsyncadd [#allocation3], 4294967168  ;;  %v21_v0 = vld [vmem:[#allocation2] sm:$0xff]  ;;  %s88_s11 = smov 1   ;;  %s89_s12 = smov [#allocation5]  }
   0xe   :  { %22 = vrot.lane.b32.xlu0 %v21_v0, %s88_s11  ;;  %s31_s13 = sshll.u32 %s89_s12, 4  ;;  %s32_s13 = int_to_ptr.vmem [resolvable:$true] %s31_s13 }
   0xf   :  { %s63_s14 = scalar_lea.vmem %s32_s13, 128  ;;  %p68_p6 = scmp.lt.s32.totalorder %s32_s13, %s32_s13 }
  0x10   :  { %p64_p5 = scmp.ne.s32.totalorder %s32_s13, %s63_s14  ;;  %p69_p7 = scmp.lt.s32.totalorder %s63_s14, %s63_s14 }
  0x12   :  { %p70_p8 = por %p69_p7, %p68_p6 }
  0x14   :  { %p71_p9 = pnand %p70_p8, %p64_p5 }
  0x80   :  { %v23_v1 = vpop.permute.xlu0 %22 }
  0x81   :  { %24 = vst [vmem:[#allocation5] sm:$0xff] %v23_v1 }
  0x82   :  { %74 = shalt.err (!%p71_p9)
}
  0x83   :  { %34 = dma.vmem_to_hbm [thread:$0]  %s32_s13, 128, %s107_s1, [#allocation4]  }
  0x84   :  { %85 = dma.done.wait [#allocation4], 128  }
  0x85   :  { %86 = vsyncadd [#allocation4], 4294967168 }
  0x86   :  { %38 = vsyncpa [#allocation3], 1 }
  0x87   :  { %39 = vsyncpa [#allocation4], 1 }

</bundles_post_ra>
